<compile_context>
chip_gen: v5e
topology: v5e:2x2
jax: 0.10.0
libtpu: 0.0.40
codegen_flags: <defaults>
</compile_context>

<pallas_src>
import functools

import jax
import jax.numpy as jnp
from jax.experimental import pallas as pl
from jax.experimental.pallas import tpu as pltpu


def _ce_kernel(logits_ref, tgt_ref, *out_refs, epsilon, num_classes,
               batch_size, block_b, emit_loss_vec):
    if emit_loss_vec:
        lossvec_ref, rowsum_ref = out_refs
    else:
        (rowsum_ref,) = out_refs

    i = pl.program_id(0)
    x = logits_ref[...].astype(jnp.float32)                # (TB, C)
    tb = x.shape[0]

    # Numerically-stable log-softmax along the class (lane) axis.
    m = jnp.max(x, axis=1, keepdims=True)
    z = x - m
    lse = jnp.log(jnp.sum(jnp.exp(z), axis=1, keepdims=True))
    neg_lp = lse - z                                        # -log_softmax(x)

    # Ragged last tile: kill padded rows with a TRUE SELECT before any multiply
    # (rows past B may contain garbage/NaN; 0 * NaN would be NaN).
    if batch_size % block_b != 0:
        row_ids = jax.lax.broadcasted_iota(jnp.int32, (tb, 1), 0) + i * block_b
        neg_lp = jnp.where(row_ids < batch_size, neg_lp, 0.0)

    # Fused smoothed-target: one select + one multiply.
    #   coeff = (1 - eps) + eps/C at the target class, eps/C elsewhere
    #   loss_vec = coeff * (-log_p) == -((1 - eps)*onehot + eps/C) * log_p
    off_val = epsilon / num_classes
    on_val = (1.0 - epsilon) + off_val
    class_ids = jax.lax.broadcasted_iota(jnp.int32, neg_lp.shape, 1)
    coeff = jnp.where(class_ids == tgt_ref[...], on_val, off_val)
    loss_vec = coeff * neg_lp

    if emit_loss_vec:
        lossvec_ref[...] = loss_vec.astype(lossvec_ref.dtype)
    # Per-row partial sums; the scalar mean(0).sum() is finished in the wrapper
    # so the batch axis stays "parallel" (megacore-shardable) instead of
    # serializing on an in-kernel accumulator.
    rowsum_ref[...] = jnp.sum(loss_vec, axis=1, keepdims=True)
    # TODO(synk): row sums could be emitted lane-dense ((1, B) layout) when
    # block_b % 128 == 0 to avoid masked stores on the (TB,1) column; their
    # lane-padding cost is instead charged to the tile-size budget below.


def _tpu_vmem_capacity_bytes():
    """Physical VMEM per TensorCore; conservative (v7x-sized) fallback."""
    try:
        info = pltpu.get_tpu_info()
        cap = getattr(info, "vmem_capacity_bytes", None)
        if cap:
            return int(cap)
    except Exception:
        pass
    return 64 * 1024 * 1024


def _vmem_budgets():
    """Returns (per-step tile budget, vmem_limit_bytes, max batch-tile rows)."""
    cap = _tpu_vmem_capacity_bytes()
    if cap >= 100 * 1024 * 1024:
        # v5e / v6e: 128 MiB physical VMEM -> big tiles amortize the ~0.35 us
        # per-grid-step overhead (this kernel is HBM-bandwidth bound).
        return 64 * 1024 * 1024, 96 * 1024 * 1024, 2048
    # v7x: 64 MiB physical VMEM per TensorCore -> keep generous headroom.
    return 22 * 1024 * 1024, 52 * 1024 * 1024, 1024


def _choose_block_b(batch, num_classes, in_bytes, out_bytes, *,
                    emit_loss_vec, budget_bytes, tb_cap):
    """Largest legal batch tile whose real per-step VMEM footprint fits budget."""
    # Native sublane packing: 8 rows for 4-byte, 16 for 2-byte, 32 for 1-byte.
    sublane = max(8, (8 * 4) // max(in_bytes, 1))

    # Per-row footprint of one pipelined grid step:
    #   2x double-buffered logits input block      : 2 * C * in_bytes
    #   2x double-buffered loss_vec output block   : 2 * C * out_bytes (optional)
    #   ~3 live full-tile f32 temporaries          : 3 * 4 * C
    #     (the f32 upcast of x, neg_lp, and the coeff/where intermediate)
    #   (TB,1) targets + rowsums, double-buffered, each padded to 128 lanes
    bytes_per_row = (2 * num_classes * in_bytes
                     + 3 * 4 * num_classes
                     + 2 * 128 * (4 + 4))
    if emit_loss_vec:
        bytes_per_row += 2 * num_classes * out_bytes

    tb = int(budget_bytes // max(bytes_per_row, 1))
    tb = min(tb, int(tb_cap))

    if tb >= batch:
        # Never collapse to a single grid step when the batch can be split:
        # >= 2 tiles keeps DMA/compute overlap and lets the "parallel" axis
        # shard across v7x's two TensorCores. Target ~4 tiles.
        target = -(-batch // 4)                        # cdiv(batch, 4)
        target = -(-target // sublane) * sublane       # round UP to sublane
        if target < batch:
            return int(target)
        return int(batch)          # genuinely tiny batch: one full-array block

    tb = (tb // sublane) * sublane
    if tb <= 0:
        # TODO(synk): for huge num_classes even a sublane-height tile can blow
        # VMEM; that needs class-axis tiling with an online max/LSE pass.
        tb = sublane
    return int(tb)


def cross_entropy_loss(logits, targets, *, num_classes, epsilon=0.1,
                       block_b=None, return_loss_vec=True):
    """logits: (B, C) float; targets: (B,) integer class indices.

    Returns (loss: f32 scalar, loss_vec: (B, C) in logits.dtype) matching the
    PyTorch module, or (loss, None) when return_loss_vec=False (skips the
    (B, C) HBM writeback -- ~2x less traffic for the scalar-loss-only case).
    Note: for sub-f32 logits, loss_vec is rounded to the input dtype; the
    scalar loss is always accumulated in f32.
    """
    B, C = logits.shape
    assert C == num_classes and num_classes > 0
    tgt2d = targets.astype(jnp.int32).reshape(B, 1)

    in_bytes = jnp.dtype(logits.dtype).itemsize
    out_bytes = in_bytes                      # loss_vec emitted in the input dtype
    budget_bytes, vmem_limit, tb_cap = _vmem_budgets()
    if block_b is None:
        block_b = _choose_block_b(
            B, C, in_bytes, out_bytes,
            emit_loss_vec=return_loss_vec,
            budget_bytes=budget_bytes, tb_cap=tb_cap)
    block_b = int(block_b)
    n_tiles = pl.cdiv(B, block_b)

    kernel = functools.partial(
        _ce_kernel,
        epsilon=float(epsilon),
        num_classes=int(num_classes),
        batch_size=int(B),
        block_b=block_b,
        emit_loss_vec=bool(return_loss_vec),
    )

    out_shape = []
    out_specs = []
    if return_loss_vec:
        out_shape.append(jax.ShapeDtypeStruct((B, C), logits.dtype))
        out_specs.append(pl.BlockSpec((block_b, C), lambda i: (i, 0)))
    out_shape.append(jax.ShapeDtypeStruct((B, 1), jnp.float32))
    out_specs.append(pl.BlockSpec((block_b, 1), lambda i: (i, 0)))

    outs = pl.pallas_call(
        kernel,
        out_shape=tuple(out_shape),
        grid_spec=pltpu.PrefetchScalarGridSpec(
            num_scalar_prefetch=0,
            grid=(n_tiles,),
            in_specs=[
                pl.BlockSpec((block_b, C), lambda i: (i, 0)),
                pl.BlockSpec((block_b, 1), lambda i: (i, 0)),
            ],
            out_specs=tuple(out_specs),
        ),
        compiler_params=pltpu.CompilerParams(
            dimension_semantics=("parallel",),
            vmem_limit_bytes=int(vmem_limit),
        ),
    )(logits, tgt2d)

    if return_loss_vec:
        loss_vec, row_sums = outs
    else:
        row_sums = outs[0] if isinstance(outs, (tuple, list)) else outs
        loss_vec = None

    # Tiny epilogue reduce (outside the parallel batch axis): mean(0).sum().
    loss = jnp.sum(row_sums) / jnp.float32(B)
    return loss, loss_vec


def _reference(logits, targets, num_classes, epsilon=0.1):
    log_probs = jax.nn.log_softmax(logits.astype(jnp.float32), axis=1)
    onehot = jax.nn.one_hot(targets, num_classes, dtype=jnp.float32)
    t = (1.0 - epsilon) * onehot + epsilon / num_classes
    loss_vec = -t * log_probs
    return loss_vec.mean(0).sum(), loss_vec


if __name__ == "__main__":
    key = jax.random.PRNGKey(0)
    k1, k2, k3, k4, k5, k6 = jax.random.split(key, 6)

    # Case 1: small single-block shape (matches the module: (batch, num_classes)).
    B, C = 8, 32
    logits = jax.random.normal(k1, (B, C), dtype=jnp.float32)
    targets = jax.random.randint(k2, (B,), 0, C, dtype=jnp.int32)
    loss, loss_vec = cross_entropy_loss(logits, targets, num_classes=C, epsilon=0.1)
    jax.block_until_ready((loss, loss_vec))
    ref_loss, ref_loss_vec = _reference(logits, targets, C, 0.1)
    assert jnp.allclose(loss, ref_loss, atol=1e-5, rtol=1e-5)
    assert jnp.allclose(loss_vec, ref_loss_vec, atol=1e-5, rtol=1e-5)

    # Case 2: multi-tile + ragged last tile via the automatic tile chooser
    # (B=20 -> 3 parallel tiles of 8 rows, last tile masked).
    B2, C2 = 20, 128
    logits2 = jax.random.normal(k3, (B2, C2), dtype=jnp.float32)
    targets2 = jax.random.randint(k4, (B2,), 0, C2, dtype=jnp.int32)
    loss2, loss_vec2 = cross_entropy_loss(logits2, targets2, num_classes=C2, epsilon=0.1)
    jax.block_until_ready((loss2, loss_vec2))
    ref_loss2, ref_loss_vec2 = _reference(logits2, targets2, C2, 0.1)
    assert jnp.allclose(loss2, ref_loss2, atol=1e-5, rtol=1e-5)
    assert jnp.allclose(loss_vec2, ref_loss_vec2, atol=1e-5, rtol=1e-5)

    # Case 2b: scalar-loss-only fast path (skips the (B, C) loss_vec writeback).
    loss2b, none_vec = cross_entropy_loss(
        logits2, targets2, num_classes=C2, epsilon=0.1, return_loss_vec=False)
    jax.block_until_ready(loss2b)
    assert none_vec is None
    assert jnp.allclose(loss2b, ref_loss2, atol=1e-5, rtol=1e-5)

    # Case 3: bf16 logits (f32 in-kernel math; loss_vec rounded to bf16 -> looser tol).
    B3, C3 = 16, 64
    logits3 = jax.random.normal(k5, (B3, C3), dtype=jnp.float32).astype(jnp.bfloat16)
    targets3 = jax.random.randint(k6, (B3,), 0, C3, dtype=jnp.int32)
    loss3, loss_vec3 = cross_entropy_loss(logits3, targets3, num_classes=C3, epsilon=0.1)
    jax.block_until_ready((loss3, loss_vec3))
    ref_loss3, ref_loss_vec3 = _reference(logits3, targets3, C3, 0.1)
    assert jnp.allclose(loss3, ref_loss3, atol=1e-4, rtol=1e-4)
    assert jnp.allclose(loss_vec3.astype(jnp.float32), ref_loss_vec3,
                        atol=3e-2, rtol=3e-2)

    print("KERNEL_OK")
</pallas_src>

<mosaic_0001>
module attributes {stable_mosaic.version = 11 : i64} {
  func.func @_ce_kernel(%arg0: i32, %arg1: memref<8x32xf32, #tpu.memory_space<vmem>>, %arg2: memref<8x1xi32, #tpu.memory_space<vmem>>, %arg3: memref<8x32xf32, #tpu.memory_space<vmem>>, %arg4: memref<8x1xf32, #tpu.memory_space<vmem>>) attributes {dimension_semantics = [#tpu.dimension_semantics<parallel>], iteration_bounds = array<i64: 1>, scalar_prefetch = 0 : i64, scratch_operands = 0 : i64, tpu.core_type = #tpu.core_type<tc>, window_params = [{transform_indices = @transform_0, window_bounds = array<i64: 8, 32>}, {transform_indices = @transform_1, window_bounds = array<i64: 8, 1>}, {transform_indices = @transform_2, window_bounds = array<i64: 8, 32>}, {transform_indices = @transform_3, window_bounds = array<i64: 8, 1>}]} {
    %c0 = arith.constant 0 : index
    %c0_0 = arith.constant 0 : index
    %0 = vector.load %arg1[%c0, %c0_0] : memref<8x32xf32, #tpu.memory_space<vmem>>, vector<8x32xf32>
    %cst = arith.constant dense<0xFF800000> : vector<8xf32>
    %1 = vector.multi_reduction <maximumf>, %0, %cst [1] : vector<8x32xf32> to vector<8xf32>
    %2 = vector.shape_cast %1 : vector<8xf32> to vector<8x1xf32>
    %3 = vector.broadcast %2 : vector<8x1xf32> to vector<8x32xf32>
    %4 = arith.subf %0, %3 : vector<8x32xf32>
    %5 = math.exp %4 : vector<8x32xf32>
    %cst_1 = arith.constant dense<0.000000e+00> : vector<8xf32>
    %6 = vector.multi_reduction <add>, %5, %cst_1 [1] : vector<8x32xf32> to vector<8xf32>
    %7 = vector.shape_cast %6 : vector<8xf32> to vector<8x1xf32>
    %8 = math.log %7 : vector<8x1xf32>
    %9 = vector.broadcast %8 : vector<8x1xf32> to vector<8x32xf32>
    %10 = arith.subf %9, %4 : vector<8x32xf32>
    %11 = tpu.iota {dimensions = array<i32: 1>} : vector<8x32xi32>
    %c0_2 = arith.constant 0 : index
    %c0_3 = arith.constant 0 : index
    %12 = vector.load %arg2[%c0_2, %c0_3] : memref<8x1xi32, #tpu.memory_space<vmem>>, vector<8x1xi32>
    %13 = vector.broadcast %12 : vector<8x1xi32> to vector<8x32xi32>
    %14 = arith.cmpi eq, %11, %13 : vector<8x32xi32>
    %cst_4 = arith.constant 0.903124988 : f32
    %cst_5 = arith.constant 3.125000e-03 : f32
    %15 = vector.broadcast %cst_4 : f32 to vector<8x32xf32>
    %16 = vector.broadcast %cst_5 : f32 to vector<8x32xf32>
    %17 = arith.select %14, %15, %16 : vector<8x32xi1>, vector<8x32xf32>
    %18 = arith.mulf %17, %10 : vector<8x32xf32>
    %c0_6 = arith.constant 0 : index
    %c0_7 = arith.constant 0 : index
    %19 = vector.load %arg3[%c0_6, %c0_7] : memref<8x32xf32, #tpu.memory_space<vmem>>, vector<8x32xf32>
    tpu.vector_store %arg3[%c0_6, %c0_7], %18 {strides = array<i32>} : memref<8x32xf32, #tpu.memory_space<vmem>>, vector<8x32xf32>,
    %cst_8 = arith.constant dense<0.000000e+00> : vector<8xf32>
    %20 = vector.multi_reduction <add>, %18, %cst_8 [1] : vector<8x32xf32> to vector<8xf32>
    %21 = vector.shape_cast %20 : vector<8xf32> to vector<8x1xf32>
    %c0_9 = arith.constant 0 : index
    %c0_10 = arith.constant 0 : index
    %22 = vector.load %arg4[%c0_9, %c0_10] : memref<8x1xf32, #tpu.memory_space<vmem>>, vector<8x1xf32>
    tpu.vector_store %arg4[%c0_9, %c0_10], %21 {strides = array<i32>} : memref<8x1xf32, #tpu.memory_space<vmem>>, vector<8x1xf32>,
    return
  }
  func.func @transform_0(%arg0: i32) -> (i32, i32) {
    %c0_i32 = arith.constant 0 : i32
    %c0_i32_0 = arith.constant 0 : i32
    return %arg0, %c0_i32 : i32, i32
  }
  func.func @transform_1(%arg0: i32) -> (i32, i32) {
    %c0_i32 = arith.constant 0 : i32
    %c0_i32_0 = arith.constant 0 : i32
    return %arg0, %c0_i32 : i32, i32
  }
  func.func @transform_2(%arg0: i32) -> (i32, i32) {
    %c0_i32 = arith.constant 0 : i32
    %c0_i32_0 = arith.constant 0 : i32
    return %arg0, %c0_i32 : i32, i32
  }
  func.func @transform_3(%arg0: i32) -> (i32, i32) {
    %c0_i32 = arith.constant 0 : i32
    %c0_i32_0 = arith.constant 0 : i32
    return %arg0, %c0_i32 : i32, i32
  }
}

</mosaic_0001>

<bundles_post_ra>
// kernel: tpu_custom_call.1
= control target key start
LH: loop header
LB: loop body
LE: loop exit
PB: predicated region body
PF: predicated region fallthrough
CT: control target
= control target key end

     0   :  { %vm15_vm0 = vcmask 261120   ;;  %s137_s0 = inlined_call_operand.vmem [shape: f32[8,32], index: 0, kind: input, shape index: {}]   ;;  %s138_s1 = inlined_call_operand.vmem [shape: s32[8,1], index: 1, kind: input, shape index: {}]   ;;  %s139_s2 = inlined_call_operand.hbm [shape: f32[8,32], index: 2, kind: output, shape index: {0}]   ;;  %s140_s3 = inlined_call_operand.vmem [shape: f32[8,1], index: 3, kind: output, shape index: {1}]  }
   0x1   :  { %v14_v0 = vld [vmem:[%s137_s0] sm:$0xff] }
   0x2   :  { %9 = vsyncpa [#allocation3], 0  ;;  %v16_v1 = vsel %vm15_vm0, %v14_v0, -inf  ;;  %v30_v2 = vld [vmem:[%s138_s1] sm:$0xff]  ;;  %v98_v3 = vmov 0   ;;  %v28_v9 = vlaneseq  ;;  %s100_s0 = smov [#allocation2]  }
   0x3   :  { %17 = vmax.xlane.f32.xlu0 %v16_v1  ;;  %66 = vset.pattern.permute.xlu1 %v98_v3  ;;  %v99_v15 = vmov 0.003125   ;;  %s48_s1 = sshll.u32 %s100_s0, 4  ;;  %s50_s18 = sshll.u32 %s139_s2, 4  ;;  %vm41_vm2 = vcmask 7168   ;;  %s49_s1 = int_to_ptr.vmem [resolvable:$true] %s48_s1  ;;  %s51_s18 = int_to_ptr.hbm [resolvable:$true] %s50_s18 }
   0x4   :  { %67 = vset.pattern.permute.xlu0 %v98_v3  ;;  %32 = vperm.xlu1 %66, %v30_v2   ;;  %v29_v11 = vand.u32 127, %v28_v9 }
  0x76   :  { %v18_v4 = vpop.xlane.xlu0 %17  ;;  %v33_v12 = vpop.permute.xlu1 %32 }
  0x77   :  { %v19_v5 = vsub.f32 %v14_v0, %v18_v4  ;;  %vm34_vm1 = vcmp.eq.s32.totalorder %v29_v11, %v33_v12 }
  0x78   :  { %v35_v16 = vsel %vm34_vm1, 0.903125, %v99_v15 }
  0x79   :  { %v20_v6 = vmul.f32 1.442695, %v19_v5 }
  0x7b   :  { %68 = vpow2.f32 %v20_v6 }
  0x81   :  { %v69_v7 = vpop.eup %68 }
  0x82   :  { %v22_v8 = vsel %vm15_vm0, %v69_v7, 0.0 }
  0x83   :  { %23 = vadd.xlane.f32.xlu0 %v22_v8 }
  0xf6   :  { %v24_v10 = vpop.xlane.xlu0 %23 }
  0xf7   :  { %70 = vlog2.f32 %v24_v10 }
  0xfd   :  { %v71_v13 = vpop.eup %70 }
  0xfe   :  { %v26_v14 = vmul.f32 0.6931472, %v71_v13 }
 0x100   :  { %v27_v17 = vsub.f32 %v26_v14, %v19_v5 }
 0x102   :  { %v36_v18 = vmul.f32 %v35_v16, %v27_v17 }
 0x104   :  { %v38_v19 = vsel %vm15_vm0, %v36_v18, 0.0  ;;  %37 = vst.msk [vmem:[#allocation2] sm:$0xff] %vm15_vm0, %v36_v18 }
 0x105   :  { %39 = vadd.xlane.f32.xlu1 %v38_v19  ;;  %53 = dma.vmem_to_hbm [thread:$0]  %s49_s1, 128, %s51_s18, [#allocation3]  }
 0x178   :  { %v40_v20 = vpop.xlane.xlu1 %39 }
 0x179   :  { %42 = vst.msk [vmem:[%s140_s3] sm:$0xff] %vm41_vm2, %v40_v20 }
 0x17a   :  { %96 = dma.done.wait [#allocation3], 128  }
 0x17b   :  { %97 = vsyncadd [#allocation3], 4294967168 }
 0x17c   :  { %62 = vsyncpa [#allocation3], 1 }

</bundles_post_ra>
